<compile_context>
chip_gen: v6e
topology: v6e:2x2x1
jax: 0.10.0
libtpu: 0.0.40
codegen_flags: <defaults>
</compile_context>

<pallas_src>
import math

import jax
import jax.numpy as jnp
from jax.experimental import pallas as pl
from jax.experimental.pallas import tpu as pltpu

# ---- constants mirroring SoftSpatialSegmentationLoss.__init__ (method='half') ----
_K_CORNER = 0.4049764
_K_EDGE = 0.7942472
_KERNEL_HALF = (
    (_K_CORNER, _K_EDGE, _K_CORNER),
    (_K_EDGE,   0.0,     _K_EDGE),
    (_K_CORNER, _K_EDGE, _K_CORNER),
)
_KERNEL_SIZE = 9
_STRENGTH = _KERNEL_SIZE / (_KERNEL_SIZE - 1.0)     # 9/8
_KERNEL_SUM = 4.0 * _K_CORNER + 4.0 * _K_EDGE
_W_HALF = _KERNEL_SUM * _STRENGTH                   # weight pinned at the true-class pixel
_EPS = 1e-7  # TODO(synk): self.eps is never defined in the reference __init__; 1e-7 matches upstream usage.

# Separable factorisation: outer(v, v) = _KERNEL_HALF + b^2 * delta_center, v = [a, b, a].
# The phantom center term only touches pixels that method='half' overwrites anyway.
_SEP_A = math.sqrt(_K_CORNER)
_SEP_B = _K_EDGE / _SEP_A


def _make_kernel(C, tH, Wp, H, W, Hp):
    a = _SEP_A
    b = _SEP_B
    n_chunks = tH // 8
    need_row_mask = Hp != H
    need_col_mask = Wp != W

    def kernel(t_ref, tu_ref, td_ref, x_ref, out_ref):
        # t_ref/tu_ref/td_ref : VMEM [1, 1, tH, Wp] int32 dense class idx of pixel /
        #                        row-above / row-below (pre-shifted, edge-clamped).
        # x_ref               : VMEM [1, C, tH, Wp] logits (input dtype).
        # out_ref             : VMEM [1, 1, 1, Wp] f32 row-reduced partial loss sums.
        h0 = pl.program_id(1) * tH

        # Loop-invariant lane masks (hoisted out of the class / chunk loops).
        col = jax.lax.broadcasted_iota(jnp.int32, (8, Wp), 1)
        not_left = col != 0
        not_right = col != Wp - 1
        col_ok = (col < W) if need_col_mask else None

        def chunk_body(k, acc):
            r0 = pl.multiple_of(k * 8, 8)
            mid = t_ref[0, 0, pl.ds(r0, 8), :]
            up = tu_ref[0, 0, pl.ds(r0, 8), :]
            dn = td_ref[0, 0, pl.ds(r0, 8), :]

            def smoothed(c, oh):
                # Row (sublane) pass of the separable 3x3 on the integer target.
                r = (a * ((up == c).astype(jnp.float32) + (dn == c).astype(jnp.float32))
                     + b * oh.astype(jnp.float32))
                # Column (lane) pass: cyclic roll + edge masks -> replicate borders,
                # no padded tensor materialized.
                left = jnp.where(not_left, pltpu.roll(r, shift=1, axis=1), r)
                right = jnp.where(not_right, pltpu.roll(r, shift=Wp - 1, axis=1), r)
                conv = a * (left + right) + b * r
                return jnp.where(oh, _W_HALF, conv)      # method='half' pin

            # Class 0 initializes the online-softmax / soft-target accumulators.
            sm0 = smoothed(0, mid == 0)
            x0 = x_ref[0, 0, pl.ds(r0, 8), :].astype(jnp.float32)
            S = sm0                         # sum_c smoothed_c
            dot_x = sm0 * x0                # sum_c smoothed_c * x_c   (m-independent)
            m = x0                          # running max
            sexp = jnp.ones((8, Wp), jnp.float32)

            # TODO(synk): for large C switch this unrolled loop to lax.fori_loop with a
            # dynamic channel index to bound code size and live ranges.
            for c in range(1, C):
                xc = x_ref[0, c, pl.ds(r0, 8), :].astype(jnp.float32)
                smc = smoothed(c, mid == c)
                S = S + smc
                dot_x = dot_x + smc * xc
                m_new = jnp.maximum(m, xc)
                sexp = sexp * jnp.exp(m - m_new) + jnp.exp(xc - m_new)
                m = m_new

            # Fused normalize + soft-target cross-entropy:
            #   pix = -sum_c (sm_c/denom) * (x_c - lse) = (lse*S - dot_x) / denom
            lse = m + jnp.log(sexp)
            denom = jnp.maximum(S, _EPS)
            inv = pl.reciprocal(denom, approx=True)
            inv = inv * (2.0 - denom * inv)   # one Newton step -> ~f32 accuracy
            pix = (lse * S - dot_x) * inv

            if need_row_mask or need_col_mask:
                keep = None
                if need_row_mask:
                    row = h0 + r0 + jax.lax.broadcasted_iota(jnp.int32, (8, Wp), 0)
                    keep = row < H
                if need_col_mask:
                    keep = col_ok if keep is None else (keep & col_ok)
                pix = jnp.where(keep, pix, 0.0)
            return acc + pix

        acc = jax.lax.fori_loop(0, n_chunks, chunk_body,
                                jnp.zeros((8, Wp), jnp.float32))
        out_ref[...] = jnp.sum(acc, axis=0).reshape(1, 1, 1, Wp)

    return kernel


def _vmem_capacity_bytes():
    try:
        return int(pltpu.get_tpu_info().vmem_capacity_bytes)
    except Exception:
        return 64 * 1024 * 1024  # conservative: v7x per-TensorCore VMEM


def _pick_tiles(B, C, H, W, itemsize):
    """Pick (tH, Hp, Wp) lane-dense tiles sized against the per-generation VMEM."""
    Wp = W if W % 128 == 0 else 128 * ((W + 127) // 128)
    vmem_cap = _vmem_capacity_bytes()
    budget = max(4 << 20, int(0.75 * (vmem_cap - (16 << 20))))

    def est(th):
        logits_buf = 2 * C * th * Wp * itemsize   # double-buffered logits tile
        tgt_buf = 3 * 2 * th * Wp * 4             # mid/up/down int32 tiles, double-buffered
        out_buf = 2 * Wp * 4
        work = 32 * 8 * Wp * 4                    # chunk-sized temporaries / loop carry
        return int(logits_buf + tgt_buf + out_buf + work + (1 << 20))

    max_th = 256
    while max_th > 8 and est(max_th) > budget:
        max_th -= 8
    if B == 1 and H > 8:
        # v7x has two TensorCores: keep >= 2 steps on the 'parallel' grid.
        max_th = max(8, min(max_th, 8 * ((H - 1) // 8)))

    tH = None
    if H % 8 == 0:
        # Prefer a tile height that divides H exactly -> no HBM-side logits padding.
        t = 8
        while t <= min(max_th, H):
            if H % t == 0:
                tH = t
            t += 8
    if tH is not None:
        Hp = H
    else:
        tH = max(8, min(max_th, 8 * ((H + 7) // 8)))
        Hp = tH * ((H + tH - 1) // tH)
    return tH, Hp, Wp, est(tH), vmem_cap


def soft_spatial_segmentation_loss(logits, target, classes):
    """logits: [B, C, H, W] float, target: [B, 1, H, W] int class values, classes: [C] int.
    Returns the scalar mean cross-entropy against spatially-smoothed soft labels."""
    B, C, H, W = logits.shape
    classes = jnp.asarray(classes, jnp.int32)
    target = target.astype(jnp.int32)
    # Keep logits in their input dtype through HBM->VMEM (bf16 stays bf16); the kernel
    # upcasts per channel and accumulates in f32.
    itemsize = jnp.dtype(logits.dtype).itemsize

    # Remap class values to dense indices 0..C-1 (values not in `classes` -> -1), so the
    # kernel compares against literal constants: no scalar prefetch / SMEM reads.
    flat = target.reshape(-1)
    pos = jnp.clip(jnp.searchsorted(classes, flat), 0, C - 1).astype(jnp.int32)
    dense = jnp.where(classes[pos] == flat, pos, jnp.int32(-1)).reshape(B, 1, H, W)

    tH, Hp, Wp, est_bytes, vmem_cap = _pick_tiles(B, C, H, W, itemsize)
    nH = Hp // tH
    pad_h, pad_w = Hp - H, Wp - W

    if pad_h or pad_w:
        # Edge padding of the (cheap, int) target keeps replicate borders exact for real
        # pixels; padded pixels are masked out of the reduction.  Logits are only padded
        # for awkward shapes (W%128 != 0 or no H tile dividing H).
        dense = jnp.pad(dense, ((0, 0), (0, 0), (0, pad_h), (0, pad_w)), mode="edge")
        logits = jnp.pad(logits, ((0, 0), (0, 0), (0, pad_h), (0, pad_w)))

    # Pre-shifted, edge-clamped halo copies: target row h-1 and row h+1.  These tile with
    # the same (1,1,tH,Wp) BlockSpec as the target, so no resident image and no in-kernel
    # halo construction.
    t_up = jnp.concatenate([dense[:, :, :1], dense[:, :, :-1]], axis=2)
    t_dn = jnp.concatenate([dense[:, :, 1:], dense[:, :, -1:]], axis=2)

    vmem_limit = int(min(max(est_bytes + (8 << 20), 32 << 20),
                         max(vmem_cap - (8 << 20), 32 << 20)))

    kernel = _make_kernel(C, tH, Wp, H, W, Hp)
    partials = pl.pallas_call(
        kernel,
        out_shape=jax.ShapeDtypeStruct((B, nH, 1, Wp), jnp.float32),
        grid_spec=pltpu.PrefetchScalarGridSpec(
            num_scalar_prefetch=0,
            grid=(B, nH),
            in_specs=[
                pl.BlockSpec((1, 1, tH, Wp), lambda bi, hi: (bi, 0, hi, 0)),
                pl.BlockSpec((1, 1, tH, Wp), lambda bi, hi: (bi, 0, hi, 0)),
                pl.BlockSpec((1, 1, tH, Wp), lambda bi, hi: (bi, 0, hi, 0)),
                pl.BlockSpec((1, C, tH, Wp), lambda bi, hi: (bi, 0, hi, 0)),
            ],
            out_specs=pl.BlockSpec((1, 1, 1, Wp), lambda bi, hi: (bi, hi, 0, 0)),
        ),
        compiler_params=pltpu.CompilerParams(
            dimension_semantics=("parallel", "parallel"),
            vmem_limit_bytes=vmem_limit,
        ),
    )(dense, t_up, t_dn, logits)

    # TODO(synk): for very wide images also tile W (target halos via pre-shifted lane
    # copies or manual make_async_copy) so the per-chunk working set stays vreg-sized.

    # nn.CrossEntropyLoss(reduction='mean') with probability targets: mean over B*H*W pixels.
    return jnp.sum(partials) / (B * H * W)


def _reference(logits, target, classes):
    """Pure-JAX reference mirroring the PyTorch forward (method='half')."""
    B, C, H, W = logits.shape
    one_hot = (target == classes.reshape(1, C, 1, 1)).astype(jnp.float32)
    k = jnp.array(_KERNEL_HALF, jnp.float32)
    pad = jnp.pad(one_hot, ((0, 0), (0, 0), (1, 1), (1, 1)), mode="edge")
    conv = jnp.zeros_like(one_hot)
    for dy in range(3):
        for dx in range(3):
            conv = conv + k[dy, dx] * pad[:, :, dy:dy + H, dx:dx + W]
    smoothed = jnp.where(one_hot == 1.0, jnp.float32(_W_HALF), conv)
    denom = jnp.maximum(jnp.sum(smoothed, axis=1, keepdims=True), _EPS)
    target_soft = smoothed / denom
    logp = jax.nn.log_softmax(logits, axis=1)
    return jnp.mean(-jnp.sum(target_soft * logp, axis=1))


if __name__ == "__main__":
    key = jax.random.PRNGKey(0)
    C = 4
    classes = jnp.array([10, 20, 30, 40], jnp.int32)   # sorted ascending class values

    def run_case(case_key, B, H, W):
        k1, k2 = jax.random.split(case_key)
        logits = jax.random.normal(k1, (B, C, H, W), dtype=jnp.float32)
        tgt_idx = jax.random.randint(k2, (B, 1, H, W), 0, C)
        target = classes[tgt_idx].astype(jnp.int32)    # [B, 1, H, W] class values
        loss = jax.block_until_ready(soft_spatial_segmentation_loss(logits, target, classes))
        ref = _reference(logits, target, classes)
        assert jnp.allclose(loss, ref, rtol=1e-4, atol=1e-5), (B, H, W, loss, ref)

    k1, k2, k3 = jax.random.split(key, 3)
    run_case(k1, B=2, H=16, W=16)   # primary small case (single H tile per batch)
    run_case(k2, B=1, H=24, W=16)   # multi-tile path: nH >= 2, cross-tile halos
    run_case(k3, B=1, H=20, W=16)   # H not a multiple of 8: padded rows + row mask
    print("KERNEL_OK")
</pallas_src>

<mosaic_0001>
module attributes {stable_mosaic.version = 11 : i64} {
  func.func @kernel(%arg0: i32, %arg1: i32, %arg2: memref<1x1x16x128xi32, #tpu.memory_space<vmem>>, %arg3: memref<1x1x16x128xi32, #tpu.memory_space<vmem>>, %arg4: memref<1x1x16x128xi32, #tpu.memory_space<vmem>>, %arg5: memref<1x4x16x128xf32, #tpu.memory_space<vmem>>, %arg6: memref<1x1x1x128xf32, #tpu.memory_space<vmem>>) attributes {dimension_semantics = [#tpu.dimension_semantics<parallel>, #tpu.dimension_semantics<parallel>], iteration_bounds = array<i64: 2, 1>, scalar_prefetch = 0 : i64, scratch_operands = 0 : i64, tpu.core_type = #tpu.core_type<tc>, window_params = [{transform_indices = @transform_0, window_bounds = array<i64: 1, 1, 16, 128>}, {transform_indices = @transform_1, window_bounds = array<i64: 1, 1, 16, 128>}, {transform_indices = @transform_2, window_bounds = array<i64: 1, 1, 16, 128>}, {transform_indices = @transform_3, window_bounds = array<i64: 1, 4, 16, 128>}, {transform_indices = @transform_4, window_bounds = array<i64: 1, 1, 1, 128>}]} {
    %0 = tpu.iota {dimensions = array<i32: 1>} : vector<8x128xi32>
    %c0_i32 = arith.constant 0 : i32
    %1 = vector.broadcast %c0_i32 : i32 to vector<8x128xi32>
    %2 = arith.cmpi ne, %0, %1 : vector<8x128xi32>
    %c127_i32 = arith.constant 127 : i32
    %3 = vector.broadcast %c127_i32 : i32 to vector<8x128xi32>
    %4 = arith.cmpi ne, %0, %3 : vector<8x128xi32>
    %c16_i32 = arith.constant 16 : i32
    %5 = vector.broadcast %c16_i32 : i32 to vector<8x128xi32>
    %6 = arith.cmpi slt, %0, %5 : vector<8x128xi32>
    %cst = arith.constant 0.000000e+00 : f32
    %7 = vector.broadcast %cst : f32 to vector<8x128xf32>
    %c0_i32_0 = arith.constant 0 : i32
    %c2_i32 = arith.constant 2 : i32
    %8 = arith.addi %c0_i32_0, %c2_i32 : i32
    %c1_i32 = arith.constant 1 : i32
    %9 = scf.for %arg7 = %c0_i32_0 to %8 step %c1_i32 iter_args(%arg8 = %7) -> (vector<8x128xf32>)  : i32 {
      %c8_i32 = arith.constant 8 : i32
      %13 = arith.muli %arg7, %c8_i32 : i32
      %14 = tpu.assume_multiple %13, 8 : i32
      %c0_6 = arith.constant 0 : index
      %c0_7 = arith.constant 0 : index
      %15 = arith.index_cast %14 : i32 to index
      %c0_8 = arith.constant 0 : index
      %16 = vector.load %arg2[%c0_6, %c0_7, %15, %c0_8] : memref<1x1x16x128xi32, #tpu.memory_space<vmem>>, vector<1x1x8x128xi32>
      %17 = vector.shape_cast %16 : vector<1x1x8x128xi32> to vector<8x128xi32>
      %c0_9 = arith.constant 0 : index
      %c0_10 = arith.constant 0 : index
      %18 = arith.index_cast %14 : i32 to index
      %c0_11 = arith.constant 0 : index
      %19 = vector.load %arg3[%c0_9, %c0_10, %18, %c0_11] : memref<1x1x16x128xi32, #tpu.memory_space<vmem>>, vector<1x1x8x128xi32>
      %20 = vector.shape_cast %19 : vector<1x1x8x128xi32> to vector<8x128xi32>
      %c0_12 = arith.constant 0 : index
      %c0_13 = arith.constant 0 : index
      %21 = arith.index_cast %14 : i32 to index
      %c0_14 = arith.constant 0 : index
      %22 = vector.load %arg4[%c0_12, %c0_13, %21, %c0_14] : memref<1x1x16x128xi32, #tpu.memory_space<vmem>>, vector<1x1x8x128xi32>
      %23 = vector.shape_cast %22 : vector<1x1x8x128xi32> to vector<8x128xi32>
      %c0_i32_15 = arith.constant 0 : i32
      %24 = vector.broadcast %c0_i32_15 : i32 to vector<8x128xi32>
      %25 = arith.cmpi eq, %17, %24 : vector<8x128xi32>
      %c0_i32_16 = arith.constant 0 : i32
      %26 = vector.broadcast %c0_i32_16 : i32 to vector<8x128xi32>
      %27 = arith.cmpi eq, %20, %26 : vector<8x128xi32>
      %28 = arith.extui %27 : vector<8x128xi1> to vector<8x128xi32>
      %29 = arith.sitofp %28 : vector<8x128xi32> to vector<8x128xf32>
      %c0_i32_17 = arith.constant 0 : i32
      %30 = vector.broadcast %c0_i32_17 : i32 to vector<8x128xi32>
      %31 = arith.cmpi eq, %23, %30 : vector<8x128xi32>
      %32 = arith.extui %31 : vector<8x128xi1> to vector<8x128xi32>
      %33 = arith.sitofp %32 : vector<8x128xi32> to vector<8x128xf32>
      %34 = arith.addf %29, %33 : vector<8x128xf32>
      %cst_18 = arith.constant 0.636377573 : f32
      %35 = vector.broadcast %cst_18 : f32 to vector<8x128xf32>
      %36 = arith.mulf %35, %34 : vector<8x128xf32>
      %37 = arith.extui %25 : vector<8x128xi1> to vector<8x128xi32>
      %38 = arith.sitofp %37 : vector<8x128xi32> to vector<8x128xf32>
      %cst_19 = arith.constant 1.24807549 : f32
      %39 = vector.broadcast %cst_19 : f32 to vector<8x128xf32>
      %40 = arith.mulf %39, %38 : vector<8x128xf32>
      %41 = arith.addf %36, %40 : vector<8x128xf32>
      %c1_i32_20 = arith.constant 1 : i32
      %42 = tpu.dynamic_rotate %41 by %c1_i32_20 dim 1 : vector<8x128xf32>, i32 -> vector<8x128xf32>
      %43 = arith.select %2, %42, %41 : vector<8x128xi1>, vector<8x128xf32>
      %c127_i32_21 = arith.constant 127 : i32
      %44 = tpu.dynamic_rotate %41 by %c127_i32_21 dim 1 : vector<8x128xf32>, i32 -> vector<8x128xf32>
      %45 = arith.select %4, %44, %41 : vector<8x128xi1>, vector<8x128xf32>
      %46 = arith.addf %43, %45 : vector<8x128xf32>
      %cst_22 = arith.constant 0.636377573 : f32
      %47 = vector.broadcast %cst_22 : f32 to vector<8x128xf32>
      %48 = arith.mulf %47, %46 : vector<8x128xf32>
      %cst_23 = arith.constant 1.24807549 : f32
      %49 = vector.broadcast %cst_23 : f32 to vector<8x128xf32>
      %50 = arith.mulf %49, %41 : vector<8x128xf32>
      %51 = arith.addf %48, %50 : vector<8x128xf32>
      %cst_24 = arith.constant 5.39650631 : f32
      %52 = vector.broadcast %cst_24 : f32 to vector<8x128xf32>
      %53 = arith.select %25, %52, %51 : vector<8x128xi1>, vector<8x128xf32>
      %c0_25 = arith.constant 0 : index
      %c0_26 = arith.constant 0 : index
      %54 = arith.index_cast %14 : i32 to index
      %c0_27 = arith.constant 0 : index
      %55 = vector.load %arg5[%c0_25, %c0_26, %54, %c0_27] : memref<1x4x16x128xf32, #tpu.memory_space<vmem>>, vector<1x1x8x128xf32>
      %56 = vector.shape_cast %55 : vector<1x1x8x128xf32> to vector<8x128xf32>
      %57 = arith.mulf %53, %56 : vector<8x128xf32>
      %cst_28 = arith.constant 1.000000e+00 : f32
      %58 = vector.broadcast %cst_28 : f32 to vector<8x128xf32>
      %c0_29 = arith.constant 0 : index
      %c1 = arith.constant 1 : index
      %59 = arith.index_cast %14 : i32 to index
      %c0_30 = arith.constant 0 : index
      %60 = vector.load %arg5[%c0_29, %c1, %59, %c0_30] : memref<1x4x16x128xf32, #tpu.memory_space<vmem>>, vector<1x1x8x128xf32>
      %61 = vector.shape_cast %60 : vector<1x1x8x128xf32> to vector<8x128xf32>
      %c1_i32_31 = arith.constant 1 : i32
      %62 = vector.broadcast %c1_i32_31 : i32 to vector<8x128xi32>
      %63 = arith.cmpi eq, %17, %62 : vector<8x128xi32>
      %c1_i32_32 = arith.constant 1 : i32
      %64 = vector.broadcast %c1_i32_32 : i32 to vector<8x128xi32>
      %65 = arith.cmpi eq, %20, %64 : vector<8x128xi32>
      %66 = arith.extui %65 : vector<8x128xi1> to vector<8x128xi32>
      %67 = arith.sitofp %66 : vector<8x128xi32> to vector<8x128xf32>
      %c1_i32_33 = arith.constant 1 : i32
      %68 = vector.broadcast %c1_i32_33 : i32 to vector<8x128xi32>
      %69 = arith.cmpi eq, %23, %68 : vector<8x128xi32>
      %70 = arith.extui %69 : vector<8x128xi1> to vector<8x128xi32>
      %71 = arith.sitofp %70 : vector<8x128xi32> to vector<8x128xf32>
      %72 = arith.addf %67, %71 : vector<8x128xf32>
      %cst_34 = arith.constant 0.636377573 : f32
      %73 = vector.broadcast %cst_34 : f32 to vector<8x128xf32>
      %74 = arith.mulf %73, %72 : vector<8x128xf32>
      %75 = arith.extui %63 : vector<8x128xi1> to vector<8x128xi32>
      %76 = arith.sitofp %75 : vector<8x128xi32> to vector<8x128xf32>
      %cst_35 = arith.constant 1.24807549 : f32
      %77 = vector.broadcast %cst_35 : f32 to vector<8x128xf32>
      %78 = arith.mulf %77, %76 : vector<8x128xf32>
      %79 = arith.addf %74, %78 : vector<8x128xf32>
      %c1_i32_36 = arith.constant 1 : i32
      %80 = tpu.dynamic_rotate %79 by %c1_i32_36 dim 1 : vector<8x128xf32>, i32 -> vector<8x128xf32>
      %81 = arith.select %2, %80, %79 : vector<8x128xi1>, vector<8x128xf32>
      %c127_i32_37 = arith.constant 127 : i32
      %82 = tpu.dynamic_rotate %79 by %c127_i32_37 dim 1 : vector<8x128xf32>, i32 -> vector<8x128xf32>
      %83 = arith.select %4, %82, %79 : vector<8x128xi1>, vector<8x128xf32>
      %84 = arith.addf %81, %83 : vector<8x128xf32>
      %cst_38 = arith.constant 0.636377573 : f32
      %85 = vector.broadcast %cst_38 : f32 to vector<8x128xf32>
      %86 = arith.mulf %85, %84 : vector<8x128xf32>
      %cst_39 = arith.constant 1.24807549 : f32
      %87 = vector.broadcast %cst_39 : f32 to vector<8x128xf32>
      %88 = arith.mulf %87, %79 : vector<8x128xf32>
      %89 = arith.addf %86, %88 : vector<8x128xf32>
      %cst_40 = arith.constant 5.39650631 : f32
      %90 = vector.broadcast %cst_40 : f32 to vector<8x128xf32>
      %91 = arith.select %63, %90, %89 : vector<8x128xi1>, vector<8x128xf32>
      %92 = arith.addf %53, %91 : vector<8x128xf32>
      %93 = arith.mulf %91, %61 : vector<8x128xf32>
      %94 = arith.addf %57, %93 : vector<8x128xf32>
      %95 = arith.maximumf %56, %61 : vector<8x128xf32>
      %96 = arith.subf %56, %95 : vector<8x128xf32>
      %97 = math.exp %96 : vector<8x128xf32>
      %98 = arith.mulf %58, %97 : vector<8x128xf32>
      %99 = arith.subf %61, %95 : vector<8x128xf32>
      %100 = math.exp %99 : vector<8x128xf32>
      %101 = arith.addf %98, %100 : vector<8x128xf32>
      %c0_41 = arith.constant 0 : index
      %c2 = arith.constant 2 : index
      %102 = arith.index_cast %14 : i32 to index
      %c0_42 = arith.constant 0 : index
      %103 = vector.load %arg5[%c0_41, %c2, %102, %c0_42] : memref<1x4x16x128xf32, #tpu.memory_space<vmem>>, vector<1x1x8x128xf32>
      %104 = vector.shape_cast %103 : vector<1x1x8x128xf32> to vector<8x128xf32>
      %c2_i32_43 = arith.constant 2 : i32
      %105 = vector.broadcast %c2_i32_43 : i32 to vector<8x128xi32>
      %106 = arith.cmpi eq, %17, %105 : vector<8x128xi32>
      %c2_i32_44 = arith.constant 2 : i32
      %107 = vector.broadcast %c2_i32_44 : i32 to vector<8x128xi32>
      %108 = arith.cmpi eq, %20, %107 : vector<8x128xi32>
      %109 = arith.extui %108 : vector<8x128xi1> to vector<8x128xi32>
      %110 = arith.sitofp %109 : vector<8x128xi32> to vector<8x128xf32>
      %c2_i32_45 = arith.constant 2 : i32
      %111 = vector.broadcast %c2_i32_45 : i32 to vector<8x128xi32>
      %112 = arith.cmpi eq, %23, %111 : vector<8x128xi32>
      %113 = arith.extui %112 : vector<8x128xi1> to vector<8x128xi32>
      %114 = arith.sitofp %113 : vector<8x128xi32> to vector<8x128xf32>
      %115 = arith.addf %110, %114 : vector<8x128xf32>
      %cst_46 = arith.constant 0.636377573 : f32
      %116 = vector.broadcast %cst_46 : f32 to vector<8x128xf32>
      %117 = arith.mulf %116, %115 : vector<8x128xf32>
      %118 = arith.extui %106 : vector<8x128xi1> to vector<8x128xi32>
      %119 = arith.sitofp %118 : vector<8x128xi32> to vector<8x128xf32>
      %cst_47 = arith.constant 1.24807549 : f32
      %120 = vector.broadcast %cst_47 : f32 to vector<8x128xf32>
      %121 = arith.mulf %120, %119 : vector<8x128xf32>
      %122 = arith.addf %117, %121 : vector<8x128xf32>
      %c1_i32_48 = arith.constant 1 : i32
      %123 = tpu.dynamic_rotate %122 by %c1_i32_48 dim 1 : vector<8x128xf32>, i32 -> vector<8x128xf32>
      %124 = arith.select %2, %123, %122 : vector<8x128xi1>, vector<8x128xf32>
      %c127_i32_49 = arith.constant 127 : i32
      %125 = tpu.dynamic_rotate %122 by %c127_i32_49 dim 1 : vector<8x128xf32>, i32 -> vector<8x128xf32>
      %126 = arith.select %4, %125, %122 : vector<8x128xi1>, vector<8x128xf32>
      %127 = arith.addf %124, %126 : vector<8x128xf32>
      %cst_50 = arith.constant 0.636377573 : f32
      %128 = vector.broadcast %cst_50 : f32 to vector<8x128xf32>
      %129 = arith.mulf %128, %127 : vector<8x128xf32>
      %cst_51 = arith.constant 1.24807549 : f32
      %130 = vector.broadcast %cst_51 : f32 to vector<8x128xf32>
      %131 = arith.mulf %130, %122 : vector<8x128xf32>
      %132 = arith.addf %129, %131 : vector<8x128xf32>
      %cst_52 = arith.constant 5.39650631 : f32
      %133 = vector.broadcast %cst_52 : f32 to vector<8x128xf32>
      %134 = arith.select %106, %133, %132 : vector<8x128xi1>, vector<8x128xf32>
      %135 = arith.addf %92, %134 : vector<8x128xf32>
      %136 = arith.mulf %134, %104 : vector<8x128xf32>
      %137 = arith.addf %94, %136 : vector<8x128xf32>
      %138 = arith.maximumf %95, %104 : vector<8x128xf32>
      %139 = arith.subf %95, %138 : vector<8x128xf32>
      %140 = math.exp %139 : vector<8x128xf32>
      %141 = arith.mulf %101, %140 : vector<8x128xf32>
      %142 = arith.subf %104, %138 : vector<8x128xf32>
      %143 = math.exp %142 : vector<8x128xf32>
      %144 = arith.addf %141, %143 : vector<8x128xf32>
      %c0_53 = arith.constant 0 : index
      %c3 = arith.constant 3 : index
      %145 = arith.index_cast %14 : i32 to index
      %c0_54 = arith.constant 0 : index
      %146 = vector.load %arg5[%c0_53, %c3, %145, %c0_54] : memref<1x4x16x128xf32, #tpu.memory_space<vmem>>, vector<1x1x8x128xf32>
      %147 = vector.shape_cast %146 : vector<1x1x8x128xf32> to vector<8x128xf32>
      %c3_i32 = arith.constant 3 : i32
      %148 = vector.broadcast %c3_i32 : i32 to vector<8x128xi32>
      %149 = arith.cmpi eq, %17, %148 : vector<8x128xi32>
      %c3_i32_55 = arith.constant 3 : i32
      %150 = vector.broadcast %c3_i32_55 : i32 to vector<8x128xi32>
      %151 = arith.cmpi eq, %20, %150 : vector<8x128xi32>
      %152 = arith.extui %151 : vector<8x128xi1> to vector<8x128xi32>
      %153 = arith.sitofp %152 : vector<8x128xi32> to vector<8x128xf32>
      %c3_i32_56 = arith.constant 3 : i32
      %154 = vector.broadcast %c3_i32_56 : i32 to vector<8x128xi32>
      %155 = arith.cmpi eq, %23, %154 : vector<8x128xi32>
      %156 = arith.extui %155 : vector<8x128xi1> to vector<8x128xi32>
      %157 = arith.sitofp %156 : vector<8x128xi32> to vector<8x128xf32>
      %158 = arith.addf %153, %157 : vector<8x128xf32>
      %cst_57 = arith.constant 0.636377573 : f32
      %159 = vector.broadcast %cst_57 : f32 to vector<8x128xf32>
      %160 = arith.mulf %159, %158 : vector<8x128xf32>
      %161 = arith.extui %149 : vector<8x128xi1> to vector<8x128xi32>
      %162 = arith.sitofp %161 : vector<8x128xi32> to vector<8x128xf32>
      %cst_58 = arith.constant 1.24807549 : f32
      %163 = vector.broadcast %cst_58 : f32 to vector<8x128xf32>
      %164 = arith.mulf %163, %162 : vector<8x128xf32>
      %165 = arith.addf %160, %164 : vector<8x128xf32>
      %c1_i32_59 = arith.constant 1 : i32
      %166 = tpu.dynamic_rotate %165 by %c1_i32_59 dim 1 : vector<8x128xf32>, i32 -> vector<8x128xf32>
      %167 = arith.select %2, %166, %165 : vector<8x128xi1>, vector<8x128xf32>
      %c127_i32_60 = arith.constant 127 : i32
      %168 = tpu.dynamic_rotate %165 by %c127_i32_60 dim 1 : vector<8x128xf32>, i32 -> vector<8x128xf32>
      %169 = arith.select %4, %168, %165 : vector<8x128xi1>, vector<8x128xf32>
      %170 = arith.addf %167, %169 : vector<8x128xf32>
      %cst_61 = arith.constant 0.636377573 : f32
      %171 = vector.broadcast %cst_61 : f32 to vector<8x128xf32>
      %172 = arith.mulf %171, %170 : vector<8x128xf32>
      %cst_62 = arith.constant 1.24807549 : f32
      %173 = vector.broadcast %cst_62 : f32 to vector<8x128xf32>
      %174 = arith.mulf %173, %165 : vector<8x128xf32>
      %175 = arith.addf %172, %174 : vector<8x128xf32>
      %cst_63 = arith.constant 5.39650631 : f32
      %176 = vector.broadcast %cst_63 : f32 to vector<8x128xf32>
      %177 = arith.select %149, %176, %175 : vector<8x128xi1>, vector<8x128xf32>
      %178 = arith.addf %135, %177 : vector<8x128xf32>
      %179 = arith.mulf %177, %147 : vector<8x128xf32>
      %180 = arith.addf %137, %179 : vector<8x128xf32>
      %181 = arith.maximumf %138, %147 : vector<8x128xf32>
      %182 = arith.subf %138, %181 : vector<8x128xf32>
      %183 = math.exp %182 : vector<8x128xf32>
      %184 = arith.mulf %144, %183 : vector<8x128xf32>
      %185 = arith.subf %147, %181 : vector<8x128xf32>
      %186 = math.exp %185 : vector<8x128xf32>
      %187 = arith.addf %184, %186 : vector<8x128xf32>
      %188 = math.log %187 : vector<8x128xf32>
      %189 = arith.addf %181, %188 : vector<8x128xf32>
      %cst_64 = arith.constant 1.000000e-07 : f32
      %190 = vector.broadcast %cst_64 : f32 to vector<8x128xf32>
      %191 = arith.maximumf %178, %190 : vector<8x128xf32>
      %192 = tpu.reciprocal %191 {approx = true} : vector<8x128xf32> -> vector<8x128xf32>
      %193 = arith.mulf %191, %192 : vector<8x128xf32>
      %cst_65 = arith.constant 2.000000e+00 : f32
      %194 = vector.broadcast %cst_65 : f32 to vector<8x128xf32>
      %195 = arith.subf %194, %193 : vector<8x128xf32>
      %196 = arith.mulf %192, %195 : vector<8x128xf32>
      %197 = arith.mulf %189, %178 : vector<8x128xf32>
      %198 = arith.subf %197, %180 : vector<8x128xf32>
      %199 = arith.mulf %198, %196 : vector<8x128xf32>
      %cst_66 = arith.constant 0.000000e+00 : f32
      %200 = vector.broadcast %cst_66 : f32 to vector<8x128xf32>
      %201 = arith.select %6, %199, %200 : vector<8x128xi1>, vector<8x128xf32>
      %202 = arith.addf %arg8, %201 : vector<8x128xf32>
      scf.yield %202 : vector<8x128xf32>
    }
    %c2_i32_1 = arith.constant 2 : i32
    %cst_2 = arith.constant dense<0.000000e+00> : vector<128xf32>
    %10 = vector.multi_reduction <add>, %9, %cst_2 [0] : vector<8x128xf32> to vector<128xf32>
    %11 = vector.shape_cast %10 : vector<128xf32> to vector<1x1x1x128xf32>
    %c0 = arith.constant 0 : index
    %c0_3 = arith.constant 0 : index
    %c0_4 = arith.constant 0 : index
    %c0_5 = arith.constant 0 : index
    %12 = vector.load %arg6[%c0, %c0_3, %c0_4, %c0_5] : memref<1x1x1x128xf32, #tpu.memory_space<vmem>>, vector<1x1x1x128xf32>
    tpu.vector_store %arg6[%c0, %c0_3, %c0_4, %c0_5], %11 {strides = array<i32>} : memref<1x1x1x128xf32, #tpu.memory_space<vmem>>, vector<1x1x1x128xf32>,
    return
  }
  func.func @transform_0(%arg0: i32, %arg1: i32) -> (i32, i32, i32, i32) {
    %c0_i32 = arith.constant 0 : i32
    %c0_i32_0 = arith.constant 0 : i32
    %c0_i32_1 = arith.constant 0 : i32
    return %arg0, %c0_i32, %arg1, %c0_i32_0 : i32, i32, i32, i32
  }
  func.func @transform_1(%arg0: i32, %arg1: i32) -> (i32, i32, i32, i32) {
    %c0_i32 = arith.constant 0 : i32
    %c0_i32_0 = arith.constant 0 : i32
    %c0_i32_1 = arith.constant 0 : i32
    return %arg0, %c0_i32, %arg1, %c0_i32_0 : i32, i32, i32, i32
  }
  func.func @transform_2(%arg0: i32, %arg1: i32) -> (i32, i32, i32, i32) {
    %c0_i32 = arith.constant 0 : i32
    %c0_i32_0 = arith.constant 0 : i32
    %c0_i32_1 = arith.constant 0 : i32
    return %arg0, %c0_i32, %arg1, %c0_i32_0 : i32, i32, i32, i32
  }
  func.func @transform_3(%arg0: i32, %arg1: i32) -> (i32, i32, i32, i32) {
    %c0_i32 = arith.constant 0 : i32
    %c0_i32_0 = arith.constant 0 : i32
    %c0_i32_1 = arith.constant 0 : i32
    return %arg0, %c0_i32, %arg1, %c0_i32_0 : i32, i32, i32, i32
  }
  func.func @transform_4(%arg0: i32, %arg1: i32) -> (i32, i32, i32, i32) {
    %c0_i32 = arith.constant 0 : i32
    %c0_i32_0 = arith.constant 0 : i32
    %c0_i32_1 = arith.constant 0 : i32
    return %arg0, %arg1, %c0_i32, %c0_i32_0 : i32, i32, i32, i32
  }
}

</mosaic_0001>

<bundles_post_ra>
// kernel: tpu_custom_call.1
= control target key start
LH: loop header
LB: loop body
LE: loop exit
PB: predicated region body
PF: predicated region fallthrough
CT: control target
= control target key end

     0   :  { %s1515_s0 = inlined_call_operand.hbm [shape: s32[2,1,16,128], index: 0, kind: input, shape index: {}]   ;;  %s1516_s1 = inlined_call_operand.hbm [shape: s32[2,1,16,128], index: 1, kind: input, shape index: {}]   ;;  %s1517_s2 = inlined_call_operand.hbm [shape: s32[2,1,16,128], index: 2, kind: input, shape index: {}]   ;;  %s1518_s3 = inlined_call_operand.hbm [shape: f32[2,4,16,128], index: 3, kind: input, shape index: {}]   ;;  %s1519_s4 = inlined_call_operand.hbm [shape: f32[2,1,1,128], index: 4, kind: output, shape index: {}]  }
   0x1   :  { %1526 = sst [smem:[#allocation20_spill]] %s1516_s1 }
   0x2   :  { %9 = vsyncpa [#allocation3], 0 }
   0x3   :  { %11 = vsyncpa [#allocation3 + $0x1], 0 }
   0x4   :  { %12 = vsyncpa [#allocation6], 0 }
   0x5   :  { %14 = vsyncpa [#allocation6 + $0x1], 0 }
   0x6   :  { %15 = vsyncpa [#allocation9], 0 }
   0x7   :  { %17 = vsyncpa [#allocation9 + $0x1], 0 }
   0x8   :  { %18 = vsyncpa [#allocation4], 0 }
   0x9   :  { %20 = vsyncpa [#allocation4 + $0x1], 0  ;;  %s1154_s15 = smov 0   ;;  %s1156_s16 = smov 0  }
   0xa   :  { %s1158_s17 = smov 0   ;;  %s1160_s18 = smov 0  }
   0xb   :  { %s1162_s19 = smov 0   ;;  %s1164_s20 = smov 0  }
   0xc LB: > { %1527 = sst [smem:[#allocation15_spill]] %s1089_s15  ;;  %s1185_s21 = sadd.s32 4294967295, %s1109_s20   ;;  %s1109_s20 = sphi %s1164_s20, %s26_s20   ;;  %s1105_s19 = sphi %s1162_s19, %s1550_s19   ;;  %s1101_s18 = sphi %s1160_s18, %s1549_s18   ;;  %s1097_s17 = sphi %s1158_s17, %s1545_s17   ;;  %s1093_s16 = sphi %s1156_s16, %s1548_s16   ;;  %s1089_s15 = sphi %s1154_s15, %s1547_s15  }
   0xd   : > { %1528 = sst [smem:[#allocation16_spill]] %s1097_s17  ;;  %s741_s22 = sadd.s32 4294967294, %s1109_s20  }
   0xe   : > { %s38_s23 = sadd.s32 1, %s1105_s19  ;;  %s47_s24 = sadd.s32 1, %s1097_s17 }
   0xf   : > { %p40_p0 = scmp.ge.s32.totalorder %s38_s23, 2  ;;  %p54_p1 = scmp.ne.s32.totalorder %s1097_s17, %s1093_s16 }
  0x10   : > { %p55_p2 = scmp.eq.s32.totalorder %s1109_s20, 0  ;;  %p60_p3 = scmp.ne.s32.totalorder %s1093_s16, %s1089_s15 }
  0x11   : > { %s1552_s23 = smov (%p40_p0, %s38_s23), 0  ;;  %p61_p5 = scmp.eq.s32.totalorder %s1185_s21, 0 }
  0x12   : > { %1529 = sst [smem:[#allocation17_spill]] %s1552_s23  ;;  %p1197_p4 = por %p55_p2, %p54_p1 }
  0x13   : > { %s42_s26 = ssub.s32 %s1105_s19, %s1552_s23  ;;  %p170_p6 = scmp.eq.s32.totalorder %s1185_s21, 1 }
  0x14   : > { %p45_p7 = scmp.eq.s32.totalorder %s42_s26, 0  ;;  %p1205_p8 = por %p61_p5, %p60_p3 }
  0x15   : > { %p1209_p9 = por %p170_p6, %p54_p1  ;;  %p176_p10 = scmp.eq.s32.totalorder %s741_s22, 1 }
  0x16   : > { %s1214_s29 = scalar_select %p45_p7, %s1097_s17, %s47_s24  }
  0x17   : > { %p1216_p11 = por %p176_p10, %p60_p3  ;;  %p814_p13 = scmp.lt.s32.totalorder %s1109_s20, 2 }
  0x18   : > { %1533 = sst [smem:[#allocation18_spill]] %s1214_s29  ;;  %s1223_s5 = sand.u32 1, %s1097_s17  }
  0x19   : > { %s1534_s30 = scalar_select %p1216_p11, 1, 0 }
  0x1a   : > { %s1226_s6 = sshll.u32 %s1223_s5, 4  ;;  %s1229_s7 = sshll.u32 %s1105_s19, 8 }
  0x1b   : > { %1535 = sst [smem:[#allocation19_spill]] %s1534_s30  ;;  %p1233_p0 = pnand %p814_p13, %p1197_p4 }
  0x1c   : > { %s219_s9 = sand.u32 1, %s1109_s20   ;;  %s1537_s1 = sld [smem:[#allocation20_spill]] }
  0x1d   : > { %s223_s13 = scalar_lea.vmem [#allocation5], %s1226_s6  ;;  %p756_p1 = scmp.ge.s32.totalorder %s1109_s20, 1 }
  0x1e   : > { %s232_s14 = sshll.u32 %s223_s13, 4  ;;  %p286_p2 = scmp.lt.s32.totalorder %s1109_s20, 3  ;;  %s233_s14 = int_to_ptr.vmem [resolvable:$true] %s232_s14 }
  0x1f   : > { %s1245_s22 = scalar_lea.sflag [#allocation6], %s219_s9  ;;  %p903_p3 = pneg %p1233_p0 }
  0x20   : > { %s914_s24 = scalar_lea.vmem %s233_s14, 256  ;;  %s1119_s25 = smov [#allocation5]  }
  0x21   : > { %p915_p4 = scmp.ne.s32.totalorder %s233_s14, %s914_s24  ;;  %s919_s26 = sshll.u32 %s1119_s25, 4  ;;  %s920_s26 = int_to_ptr.vmem [resolvable:$false] %s919_s26 }
  0x22   : > { %s231_s12 = scalar_lea.hbm %s1537_s1, %s1229_s7  ;;  %s921_s10 = scalar_lea.vmem %s920_s26, 512 }
  0x23   : > { %p917_p5 = pnand %p915_p4, %p903_p3  ;;  %p922_p7 = scmp.lt.s32.totalorder %s233_s14, %s920_s26 }
  0x24   : > { %p923_p10 = scmp.lt.s32.totalorder %s921_s10, %s914_s24 }
  0x25   : > { %p918_p6 = pneg %p917_p5 }
  0x26   : > { %p924_p13 = por %p923_p10, %p922_p7 }
  0x28   : > { %p925_p12 = pnand %p924_p13, %p918_p6 }
  0x2a   : > { %928 = shalt.err (!%p925_p12)
}
  0x2b   : > { %s1524_s11 = smov 128   ;;  %s1121_s9 = smov 8  }
  0x2c   : > { %803 = dma.hbm_to_vmem [thread:$0]  (!%p1233_p0), %s231_s12, 256, %s233_s14, %s1245_s22, %s1524_s11, %s1524_s11, %s1121_s9  }
  0x2d   : > { %p1262_p4 = pnand %p756_p1, %p286_p2  ;;  %s208_s26 = scalar_lea.hbm %s1515_s0, %s1229_s7 }
  0x2e   : > { %s200_s10 = scalar_lea.vmem [#allocation2], %s1226_s6  ;;  %s254_s17 = scalar_lea.hbm %s1517_s2, %s1229_s7 }
  0x2f   : > { %s209_s1 = sshll.u32 %s200_s10, 4  ;;  %s197_s30 = scalar_lea.sflag [#allocation3], %s1223_s5  ;;  %s210_s1 = int_to_ptr.vmem [resolvable:$true] %s209_s1 }
  0x30   : > { %s942_s15 = scalar_lea.vmem %s210_s1, 256  ;;  %s1122_s12 = smov [#allocation2]  }
  0x31   : > { %p943_p12 = scmp.ne.s32.totalorder %s210_s1, %s942_s15  ;;  %s947_s14 = sshll.u32 %s1122_s12, 4  ;;  %s948_s14 = int_to_ptr.vmem [resolvable:$false] %s947_s14 }
  0x32   : > { %s949_s11 = scalar_lea.vmem %s948_s14, 512  ;;  %p950_p5 = scmp.lt.s32.totalorder %s210_s1, %s948_s14 }
  0x33   : > { %p945_p1 = pnand %p943_p12, %p903_p3  ;;  %p951_p6 = scmp.lt.s32.totalorder %s949_s11, %s942_s15 }
  0x35   : > { %p946_p2 = pneg %p945_p1  ;;  %p952_p7 = por %p951_p6, %p950_p5 }
  0x37   : > { %p953_p10 = pnand %p952_p7, %p946_p2 }
  0x39   : > { %956 = shalt.err (!%p953_p10)
}
  0x3a   : > { %s1539_s23 = smov 128   ;;  %s246_s29 = scalar_lea.vmem [#allocation7], %s1226_s6 }
  0x3b   : > { %800 = dma.hbm_to_vmem [thread:$0]  (!%p1233_p0), %s208_s26, 256, %s210_s1, %s197_s30, %s1539_s23, %s1539_s23, %s1121_s9  }
  0x3c   : > { %s255_s24 = sshll.u32 %s246_s29, 4  ;;  %s753_s25 = sshll.u32 %s1223_s5, 6  ;;  %s256_s24 = int_to_ptr.vmem [resolvable:$true] %s255_s24 }
  0x3d   : > { %s970_s10 = scalar_lea.vmem %s256_s24, 256  ;;  %s1123_s15 = smov [#allocation7]  }
  0x3e   : > { %p971_p13 = scmp.ne.s32.totalorder %s256_s24, %s970_s10  ;;  %s975_s11 = sshll.u32 %s1123_s15, 4  ;;  %s976_s11 = int_to_ptr.vmem [resolvable:$false] %s975_s11 }
  0x3f   : > { %s977_s12 = scalar_lea.vmem %s976_s11, 512  ;;  %p978_p2 = scmp.lt.s32.totalorder %s256_s24, %s976_s11 }
  0x40   : > { %p973_p12 = pnand %p971_p13, %p903_p3  ;;  %p979_p5 = scmp.lt.s32.totalorder %s977_s12, %s970_s10 }
  0x42   : > { %p974_p1 = pneg %p973_p12  ;;  %p980_p6 = por %p979_p5, %p978_p2 }
  0x44   : > { %p981_p7 = pnand %p980_p6, %p974_p1 }
  0x46   : > { %984 = shalt.err (!%p981_p7)
}
  0x47   : > { %806 = dma.hbm_to_vmem [thread:$0]  (!%p1233_p0), %s254_s17, 256, %s256_s24, %s1245_s22, %s1539_s23, %s1539_s23, %s1121_s9  }
  0x48   : > { %s786_s6 = sshll.u32 %s1105_s19, 10  ;;  %s269_s10 = scalar_lea.vmem [#allocation8], %s753_s25 }
  0x49   : > { %s277_s29 = scalar_lea.hbm %s1518_s3, %s786_s6  ;;  %s278_s15 = sshll.u32 %s269_s10, 4  ;;  %s279_s15 = int_to_ptr.vmem [resolvable:$true] %s278_s15 }
  0x4a   : > { %s266_s11 = scalar_lea.sflag [#allocation9], %s1223_s5  ;;  %s998_s12 = scalar_lea.vmem %s279_s15, 1024 }
  0x4b   : > { %p999_p10 = scmp.ne.s32.totalorder %s279_s15, %s998_s12  ;;  %s1124_s7 = smov [#allocation8]  }
  0x4c   : > { %s1003_s1 = sshll.u32 %s1124_s7, 4  ;;  %s1004_s1 = int_to_ptr.vmem [resolvable:$false] %s1003_s1 }
  0x4d   : > { %p1001_p13 = pnand %p999_p10, %p903_p3  ;;  %s1005_s30 = scalar_lea.vmem %s1004_s1, 2048 }
  0x4e   : > { %p1006_p1 = scmp.lt.s32.totalorder %s279_s15, %s1004_s1  ;;  %p1007_p2 = scmp.lt.s32.totalorder %s1005_s30, %s998_s12 }
  0x4f   : > { %p1002_p12 = pneg %p1001_p13 }
  0x50   : > { %p1008_p5 = por %p1007_p2, %p1006_p1 }
  0x52   : > { %p1009_p6 = pnand %p1008_p5, %p1002_p12 }
  0x54   : > { %1012 = shalt.err (!%p1009_p6)
}
  0x55   : > { %809 = dma.hbm_to_vmem [thread:$0]  (!%p1233_p0), %s277_s29, 1024, %s279_s15, %s266_s11, %s1539_s23, %s1539_s23, %s1121_s9  }
  0x56   : > { %290 = sbr.rel (%p1262_p4) target bundleno = 305 (0x131), region = 36  ;;  %s1316_s17 = sand.u32 (!%p1262_p4), 1, %s1093_s16  }
  0x57   : > { %s1319_s5 = sshll.u32 (!%p1262_p4), %s1316_s17, 4  ;;  %s293_s22 = scalar_lea.sflag (!%p1262_p4), [#allocation3], %s1316_s17 }
  0x58   : > { %s296_s24 = scalar_lea.vmem (!%p1262_p4), [#allocation2], %s1319_s5 }
  0x5b   : > { %1072 = dma.done.wait (%p1205_p8), %s293_s22, 256  }
  0x5c   : > { %1074 = vsyncadd (%p1205_p8), %s293_s22, 4294967040  ;;  %s301_s8 = sand.u32 1, %s1185_s21   ;;  %s305_s13 = scalar_lea.vmem [#allocation5], %s1319_s5 }
  0x5d   : > { %s302_s9 = scalar_lea.sflag [#allocation6], %s301_s8 }
  0x5e   : > { %1076 = dma.done.wait (%p1205_p8), %s302_s9, 512  }
  0x5f   : > { %1078 = vsyncadd (%p1205_p8), %s302_s9, 4294966784  ;;  %s760_s23 = sshll.u32 %s1316_s17, 6  ;;  %s314_s25 = scalar_lea.vmem [#allocation7], %s1319_s5 }
  0x60   : > { %s320_s6 = scalar_lea.sflag [#allocation9], %s1316_s17  ;;  %s1336_s26 = scalar_lea.vmem [#allocation8], %s760_s23 }
  0x61   : > { %1080 = dma.done.wait (%p1205_p8), %s320_s6, 1024  }
  0x62   : > { %1082 = vsyncadd (%p1205_p8), %s320_s6, 4294966272  ;;  %v366_v0 = vlaneseq  ;;  %s361_s21 = scalar_lea.vmem [#allocation10], %s1316_s17  ;;  %v1348_v2 = vmov 0.0   ;;  %s1350_s14 = smov 0  }
  0x64   : > { %v1342_v1 = vand.u32 127, %v366_v0 }
  0x66   : > { %vm368_vm0 = vcmp.ne.s32.totalorder %v1342_v1, 0  ;;  %vm369_vm1 = vcmp.ne.s32.totalorder %v1342_v1, 127  ;;  %vm370_vm2 = vcmp.lt.s32.totalorder %v1342_v1, 16 }
  0x67 LB: >> { %s1359_s27 = sshll.u32 %s1117_s14, 3  ;;  %v1125_v6 = vmov 0.0   ;;  %s1126_s11 = smov 1   ;;  %s1117_s14 = sphi %s1350_s14, %s376_s14   ;;  %v1113_v2 = vphi %v1348_v2, %v1540_v2  }
  0x68   : >> { %s379_s29 = scalar_lea.vmem %s296_s24, %s1359_s27 [#allocation2]  ;;  %s381_s10 = scalar_lea.vmem %s305_s13, %s1359_s27 [#allocation5] }
  0x69   : >> { %v1367_v3 = vld [vmem:[%s379_s29] sm:$0xff]  ;;  %s383_s15 = scalar_lea.vmem %s314_s25, %s1359_s27 [#allocation7]  ;;  %s1127_s12 = smov 127  }
  0x6a   : >> { %v382_v4 = vld [vmem:[%s381_s10] sm:$0xff]  ;;  %vm415_vm3 = vcmp.eq.s32.totalorder %v1367_v3, 1  ;;  %vm385_vm5 = vcmp.eq.s32.totalorder %v1367_v3, 0  ;;  %vm453_vm9 = vcmp.eq.s32.totalorder %v1367_v3, 2  ;;  %vm492_vm13 = vcmp.eq.s32.totalorder %v1367_v3, 3  ;;  %s409_s7 = scalar_lea.vmem %s1336_s26, %s1359_s27 [#allocation8]  ;;  %s376_s14 = sadd.s32 1, %s1117_s14  }
  0x6b   : >> { %v384_v5 = vld [vmem:[%s383_s15] sm:$0xff]  ;;  %vm416_vm4 = vcmp.eq.s32.totalorder %v382_v4, 1  ;;  %vm386_vm6 = vcmp.eq.s32.totalorder %v382_v4, 0  ;;  %v769_v8 = vsel %vm415_vm3, 1.0, %v1125_v6  ;;  %v764_v11 = vsel %vm385_vm5, 1.0, %v1125_v6  ;;  %v1402_v35 = vld [vmem:[%s409_s7 + $0x10] sm:$0xff] }
  0x6c   : >> { %v767_v7 = vsel %vm416_vm4, 1.0, %v1125_v6  ;;  %vm419_vm7 = vcmp.eq.s32.totalorder %v384_v5, 1  ;;  %v762_v9 = vsel %vm386_vm6, 1.0, %v1125_v6  ;;  %vm389_vm8 = vcmp.eq.s32.totalorder %v384_v5, 0  ;;  %v1404_v36 = vld [vmem:[%s409_s7] sm:$0xff]  ;;  %v1413_v45 = vld [vmem:[%s409_s7 + $0x30] sm:$0xff] }
  0x6d   : >> { %v768_v10 = vsel %vm419_vm7, 1.0, %v1125_v6  ;;  %v426_v13 = vmul.f32 1.2480755, %v769_v8  ;;  %v763_v14 = vsel %vm389_vm8, 1.0, %v1125_v6  ;;  %v396_v16 = vmul.f32 1.2480755, %v764_v11 }
  0x6e   : >> { %v422_v12 = vadd.f32 %v768_v10, %v767_v7  ;;  %v392_v15 = vadd.f32 %v763_v14, %v762_v9  ;;  %vm454_vm10 = vcmp.eq.s32.totalorder %v382_v4, 2  ;;  %vm457_vm11 = vcmp.eq.s32.totalorder %v384_v5, 2  ;;  %v1408_v38 = vld [vmem:[%s409_s7 + $0x20] sm:$0xff]  ;;  %p373_p8 = scmp.ge.s32.totalorder %s376_s14, 2  }
  0x6f   : >> { %v772_v18 = vsel %vm454_vm10, 1.0, %v1125_v6  ;;  %v773_v19 = vsel %vm457_vm11, 1.0, %v1125_v6  ;;  %v774_v22 = vsel %vm453_vm9, 1.0, %v1125_v6  ;;  %vm493_vm12 = vcmp.eq.s32.totalorder %v382_v4, 3  ;;  %s780_s1 = sshll.u32 (%p373_p8), %s1101_s18, 4  ;;  %s562_s30 = sshll.u32 (%p373_p8), %s361_s21, 4  ;;  %s563_s30 = int_to_ptr.vmem [resolvable:$true] %s562_s30 }
  0x70   : >> { %v423_v17 = vmul.f32 0.6363776, %v422_v12  ;;  %v393_v20 = vmul.f32 0.6363776, %v392_v15  ;;  %v460_v21 = vadd.f32 %v773_v19, %v772_v18  ;;  %v777_v24 = vsel %vm493_vm12, 1.0, %v1125_v6  ;;  %s560_s9 = scalar_lea.hbm (%p373_p8), %s1519_s4, %s780_s1  ;;  %s549_s5 = scalar_lea.sflag (%p373_p8), [#allocation4], %s1316_s17 }
  0x71   : >> { %vm496_vm14 = vcmp.eq.s32.totalorder %v384_v5, 3  ;;  %v464_v28 = vmul.f32 1.2480755, %v774_v22  ;;  %v779_v30 = vsel %vm492_vm13, 1.0, %v1125_v6  ;;  %v442_v37 = vmax.f32 %v1404_v36, %v1402_v35  ;;  %s1013_s24 = scalar_lea.vmem (%p373_p8), %s563_s30, 16  ;;  %s1128_s13 = smov (%p373_p8), [#allocation10]  }
  0x72   : >> { %v1381_v23 = vadd.f32 %v426_v13, %v423_v17  ;;  %v1384_v25 = vadd.f32 %v396_v16, %v393_v20  ;;  %v778_v26 = vsel %vm496_vm14, 1.0, %v1125_v6  ;;  %v461_v27 = vmul.f32 0.6363776, %v460_v21  ;;  %p1014_p0 = scmp.ne.s32.totalorder (%p373_p8), %s563_s30, %s1013_s24  ;;  %s1017_s23 = sshll.u32 (%p373_p8), %s1128_s13, 4  ;;  %s1018_s23 = int_to_ptr.vmem [resolvable:$false] %s1017_s23 }
  0x73   : >> { %v499_v29 = vadd.f32 %v778_v26, %v777_v24  ;;  %v503_v33 = vmul.f32 1.2480755, %v779_v30  ;;  %v443_v39 = vsub.f32 %v1404_v36, %v442_v37  ;;  %v446_v40 = vsub.f32 %v1402_v35, %v442_v37  ;;  %s1019_s18 = scalar_lea.vmem (%p373_p8), %s1018_s23, 32  ;;  %p1020_p7 = scmp.lt.s32.totalorder (%p373_p8), %s563_s30, %s1018_s23 }
  0x74   : >> { %428 = vrot.lane.b32.xlu1 %v1381_v23, %s1126_s11  ;;  %398 = vrot.lane.b32.xlu0 %v1384_v25, %s1126_s11  ;;  %v1391_v31 = vadd.f32 %v464_v28, %v461_v27  ;;  %v480_v41 = vmax.f32 %v442_v37, %v1408_v38  ;;  %v436_v10 = vmul.f32 1.2480755, %v1381_v23  ;;  %v406_v12 = vmul.f32 1.2480755, %v1384_v25  ;;  %p1015_p3 = pnand (%p373_p8), %p1014_p0, %p1209_p9  ;;  %p1021_p10 = scmp.lt.s32.totalorder (%p373_p8), %s1019_s18, %s1013_s24 }
  0x75   : >> { %v500_v32 = vmul.f32 0.6363776, %v499_v29  ;;  %v444_v42 = vmul.f32 1.442695, %v443_v39  ;;  %v447_v43 = vmul.f32 1.442695, %v446_v40 }
  0x76   : >> { %v481_v44 = vsub.f32 %v442_v37, %v480_v41  ;;  %v485_v47 = vsub.f32 %v1408_v38, %v480_v41  ;;  %v1417_v48 = vmax.f32 %v480_v41, %v1413_v45  ;;  %p1016_p4 = pneg (%p373_p8), %p1015_p3  ;;  %p1022_p13 = por (%p373_p8), %p1021_p10, %p1020_p7 }
  0x77   : >> { %v1395_v34 = vadd.f32 %v503_v33, %v500_v32  ;;  %885 = vpow2.f32 %v444_v42 }
  0x78   : >> { %431 = vrot.lane.b32.xlu1 %v1381_v23, %s1127_s12  ;;  %401 = vrot.lane.b32.xlu0 %v1384_v25, %s1127_s12  ;;  %887 = vpow2.f32 %v447_v43  ;;  %v482_v46 = vmul.f32 1.442695, %v481_v44  ;;  %v486_v49 = vmul.f32 1.442695, %v485_v47  ;;  %v520_v50 = vsub.f32 %v480_v41, %v1417_v48  ;;  %p1023_p12 = pnand (%p373_p8), %p1022_p13, %p1016_p4 }
  0x79   : >> { %v524_v52 = vsub.f32 %v1413_v45, %v1417_v48  ;;  %v513_v30 = vmul.f32 1.2480755, %v1395_v34 }
  0x7a   : >> { %889 = vpow2.f32 %v482_v46  ;;  %v521_v51 = vmul.f32 1.442695, %v520_v50 }
  0x7b   : >> { %891 = vpow2.f32 %v486_v49  ;;  %v525_v54 = vmul.f32 1.442695, %v524_v52 }
  0x7c   : >> { %469 = vrot.lane.b32.xlu1 %v1391_v31, %s1127_s12  ;;  %466 = vrot.lane.b32.xlu0 %v1391_v31, %s1126_s11  ;;  %893 = vpow2.f32 %v521_v51 }
  0x7d   : >> { %895 = vpow2.f32 %v525_v54 }
  0x80   : >> { %508 = vrot.lane.b32.xlu1 %v1395_v34, %s1127_s12  ;;  %505 = vrot.lane.b32.xlu0 %v1395_v34, %s1126_s11 }
  0x84   : >> { %v886_v53 = vpop.eup %885 }
  0x85   : >> { %v888_v55 = vpop.eup %887 }
  0x86   : >> { %v449_v56 = vadd.f32 %v888_v55, %v886_v53 }
  0x87   : >> { %v890_v57 = vpop.eup %889 }
  0x88   : >> { %v484_v59 = vmul.f32 %v890_v57, %v449_v56  ;;  %v892_v60 = vpop.eup %891 }
  0x89   : >> { %v894_v0 = vpop.eup %893 }
  0x8a   : >> { %v488_v63 = vadd.f32 %v892_v60, %v484_v59  ;;  %v896_v16 = vpop.eup %895 }
  0x8c   : >> { %v523_v15 = vmul.f32 %v894_v0, %v488_v63 }
  0x8e   : >> { %v527_v26 = vadd.f32 %v896_v16, %v523_v15 }
  0x90   : >> { %897 = vlog2.f32 %v527_v26 }
  0x9d   : >> { %v898_v49 = vpop.eup %897 }
  0x9e   : >> { %v529_v52 = vmul.f32 0.6931472, %v898_v49 }
  0xa0   : >> { %v530_v55 = vadd.f32 %v529_v52, %v1417_v48 }
  0xe6   : >> { %v429_v58 = vpop.permute.xlu1 %428  ;;  %v399_v61 = vpop.permute.xlu0 %398 }
  0xe7   : >> { %v430_v4 = vsel %vm368_vm0, %v429_v58, %v1381_v23  ;;  %v400_v7 = vsel %vm368_vm0, %v399_v61, %v1384_v25 }
  0xea   : >> { %v432_v62 = vpop.permute.xlu1 %431  ;;  %v402_v6 = vpop.permute.xlu0 %401 }
  0xeb   : >> { %v433_v5 = vsel %vm369_vm1, %v432_v62, %v1381_v23  ;;  %v403_v9 = vsel %vm369_vm1, %v402_v6, %v1384_v25  ;;  %v474_v23 = vmul.f32 1.2480755, %v1391_v31 }
  0xec   : >> { %v434_v8 = vadd.f32 %v433_v5, %v430_v4  ;;  %v404_v11 = vadd.f32 %v403_v9, %v400_v7 }
  0xee   : >> { %v435_v13 = vmul.f32 0.6363776, %v434_v8  ;;  %v470_v14 = vpop.permute.xlu1 %469  ;;  %v405_v17 = vmul.f32 0.6363776, %v404_v11  ;;  %v467_v19 = vpop.permute.xlu0 %466 }
  0xef   : >> { %v471_v18 = vsel %vm369_vm1, %v470_v14, %v1391_v31  ;;  %v468_v20 = vsel %vm368_vm0, %v467_v19, %v1391_v31 }
  0xf0   : >> { %v437_v21 = vadd.f32 %v436_v10, %v435_v13  ;;  %v407_v22 = vadd.f32 %v406_v12, %v405_v17  ;;  %v472_v24 = vadd.f32 %v471_v18, %v468_v20 }
  0xf2   : >> { %v509_v25 = vpop.permute.xlu1 %508  ;;  %v473_v27 = vmul.f32 0.6363776, %v472_v24  ;;  %v506_v29 = vpop.permute.xlu0 %505  ;;  %v438_v33 = vsel %vm415_vm3, 5.3965063, %v437_v21  ;;  %v408_v31 = vsel %vm385_vm5, 5.3965063, %v407_v22 }
  0xf3   : >> { %v510_v28 = vsel %vm369_vm1, %v509_v25, %v1395_v34  ;;  %v507_v32 = vsel %vm368_vm0, %v506_v29, %v1395_v34  ;;  %v439_v42 = vadd.f32 %v438_v33, %v408_v31  ;;  %v440_v50 = vmul.f32 %v1402_v35, %v438_v33 }
  0xf4   : >> { %v475_v37 = vadd.f32 %v474_v23, %v473_v27  ;;  %v511_v39 = vadd.f32 %v510_v28, %v507_v32  ;;  %v411_v51 = vmul.f32 %v1404_v36, %v408_v31 }
  0xf6   : >> { %v476_v40 = vsel %vm453_vm9, 5.3965063, %v475_v37  ;;  %v512_v41 = vmul.f32 0.6363776, %v511_v39  ;;  %v441_v54 = vadd.f32 %v440_v50, %v411_v51 }
  0xf7   : >> { %v477_v44 = vadd.f32 %v476_v40, %v439_v42  ;;  %v478_v53 = vmul.f32 %v1408_v38, %v476_v40 }
  0xf8   : >> { %v514_v43 = vadd.f32 %v513_v30, %v512_v41 }
  0xf9   : >> { %v479_v57 = vadd.f32 %v478_v53, %v441_v54 }
  0xfa   : >> { %v515_v46 = vsel %vm492_vm13, 5.3965063, %v514_v43 }
  0xfb   : >> { %v516_v34 = vadd.f32 %v515_v46, %v477_v44  ;;  %v517_v56 = vmul.f32 %v1413_v45, %v515_v46 }
  0xfd   : >> { %v531_v47 = vmax.f32 %v516_v34, 1e-07  ;;  %v518_v3 = vadd.f32 %v517_v56, %v479_v57  ;;  %v536_v60 = vmul.f32 %v530_v55, %v516_v34 }
  0xff   : >> { %899 = vrcp.f32 %v531_v47  ;;  %v537_v63 = vsub.f32 %v536_v60, %v518_v3 }
 0x10c   : >> { %v900_v58 = vpop.eup %899 }
 0x10d   : >> { %v533_v59 = vmul.f32 %v900_v58, %v531_v47 }
 0x10f   : >> { %v534_v61 = vsub.f32 2.0, %v533_v59 }
 0x111   : >> { %v535_v62 = vmul.f32 %v900_v58, %v534_v61 }
 0x113   : >> { %v538_v0 = vmul.f32 %v537_v63, %v535_v62 }
 0x114   : > { %375 = sbr.rel (!%p373_p8) target bundleno = 103 (0x67), region = 132 }
 0x115   : >> { %v539_v35 = vsel %vm370_vm2, %v538_v0, 0.0 }
 0x116   : >> { %v540_v36 = vadd.f32 %v1113_v2, %v539_v35  }
 0x118   : >> { %v1540_v2 = vmov %v540_v36  ;;  %v541_v38 = vrot.slane (%p373_p8), %v540_v36, 4 }
 0x11a   : > { %v542_v45 = vadd.f32 %v541_v38, %v540_v36 }
 0x11c   : > { %v543_v48 = vrot.slane %v542_v45, 2 }
 0x11e   : > { %v544_v4 = vadd.f32 %v543_v48, %v542_v45 }
 0x120   : > { %v545_v2 = vrot.slane %v544_v4, 1 }
 0x122   : > { %v546_v5 = vadd.f32 %v545_v2, %v544_v4 }
 0x124   : > { %547 = vst [vmem:[%s361_s21] sm:$0x1] %v546_v5 }
 0x125   : > { %1026 = shalt.err (!%p1023_p12)
}
 0x126   : > { %s1027_s25 = scalar_lea.hbm %s560_s9, 16  ;;  %s1031_s26 = scalar_lea.hbm %s1519_s4, 32 }
 0x127   : > { %p1028_p1 = scmp.ne.s32.totalorder %s560_s9, %s1027_s25  ;;  %p1032_p6 = scmp.lt.s32.totalorder %s560_s9, %s1519_s4 }
 0x128   : > { %p1033_p8 = scmp.lt.s32.totalorder %s1031_s26, %s1027_s25 }
 0x129   : > { %p1029_p2 = pnand %p1028_p1, %p1209_p9 }
 0x12a   : > { %p1034_p0 = por %p1033_p8, %p1032_p6 }
 0x12b   : > { %p1030_p5 = pneg %p1029_p2 }
 0x12d   : > { %p1035_p3 = pnand %p1034_p0, %p1030_p5 }
 0x12f   : > { %1038 = shalt.err (!%p1035_p3)
}
 0x130   : > { %795 = dma.vmem_to_hbm [thread:$0]  (%p1209_p9), %s563_s30, 16, %s560_s9, %s549_s5  }
 0x131 PF: > { %s1541_s27 = sld [smem:[#allocation15_spill]]  ;;  %p1543_p4 = scmp.ge.s32.totalorder %s1109_s20, 2 }
 0x133   : > { %p811_p7 = pnand %p1543_p4, %p1216_p11 }
 0x135   : > { %p812_p10 = pneg %p811_p7 }
 0x137   : > { %s574_s10 = sand.u32 1, %s1541_s27  }
 0x138   : > { %s575_s15 = scalar_lea.sflag [#allocation4], %s574_s10 }
 0x139   : > { %1084 = dma.done.wait (%p812_p10), %s575_s15, 16  }
 0x13a   : > { %1086 = vsyncadd (%p812_p10), %s575_s15, 4294967280  ;;  %s26_s20 = sadd.s32 1, %s1109_s20   ;;  %s1544_s11 = sld [smem:[#allocation16_spill]] }
 0x13b   : > { %p23_p13 = scmp.ge.s32.totalorder %s26_s20, 4   ;;  %s1545_s17 = sld [smem:[#allocation18_spill]] }
 0x13c   : > { %s1546_s28 = sld [smem:[#allocation17_spill]]  ;;  %s1547_s15 = smov %s1093_s16 }
 0x13d   : > { %s1549_s18 = smov %s1105_s19 }
 0x13e   :  { %25 = sbr.rel (!%p23_p13) target bundleno = 12 (0xc), region = 143 }
 0x140   : > { %s1548_s16 = smov %s1544_s11 }
 0x142   : > { %s1550_s19 = smov %s1546_s28 }
 0x143   :  { %579 = vsyncpa [#allocation3], 1 }
 0x144   :  { %581 = vsyncpa [#allocation3 + $0x1], 1 }
 0x145   :  { %582 = vsyncpa [#allocation6], 1 }
 0x146   :  { %584 = vsyncpa [#allocation6 + $0x1], 1 }
 0x147   :  { %585 = vsyncpa [#allocation9], 1 }
 0x148   :  { %587 = vsyncpa [#allocation9 + $0x1], 1 }
 0x149   :  { %588 = vsyncpa [#allocation4], 1 }
 0x14a   :  { %590 = vsyncpa [#allocation4 + $0x1], 1 }

</bundles_post_ra>
